<compile_context>
chip_gen: v7x
topology: tpu7x:2x2x1
jax: 0.10.0
libtpu: 0.0.40
codegen_flags: <defaults>
</compile_context>

<pallas_src>
import functools
import math

import jax
import jax.numpy as jnp
from jax.experimental import pallas as pl
from jax.experimental.pallas import tpu as pltpu

NEG_INF = -1e30


def _round_up(x, m):
    return ((x + m - 1) // m) * m


def _vmem_limit_bytes():
    # Size the scoped VMEM limit against the physical capacity of the chip
    # (the default scoped limit is only 16/32 MiB); leave ~20% headroom.
    try:
        cap = int(pltpu.get_tpu_info().vmem_capacity_bytes)
    except Exception:
        cap = 64 * 1024 * 1024  # v7x-safe fallback
    return int(min(cap * 4 // 5, 100 * 1024 * 1024))


def _hetgcn_aggregate_kernel(rhs_ref, adj_ref, expand_ref, o_ref, acc_ref, *, hd):
    # rhs_ref    : [Ts, HD+H]  bf16, concat(weighted messages w*h, weights w)
    # adj_ref    : [Td, Ts]    int8 0/1 adjacency tile (row = dst, col = src)
    # expand_ref : [H, HD]     f32 one-hot head->lane expansion (precomputed)
    # o_ref      : [Td, HD]    lane-dense output tile
    # acc_ref    : [Td, HD+H]  f32 accumulator, persistent across src tiles
    k = pl.program_id(1)

    @pl.when(k == 0)
    def _init():
        acc_ref[...] = jnp.zeros_like(acc_ref)

    # Single fused aggregation: numerator and denominator in one MXU pass.
    adj = adj_ref[...].astype(rhs_ref.dtype)          # int8 -> bf16 (0/1 exact)
    acc_ref[...] += jnp.dot(adj, rhs_ref[...],
                            preferred_element_type=jnp.float32)

    @pl.when(k == pl.num_programs(1) - 1)
    def _finalize():
        acc = acc_ref[...]
        numer = acc[:, :hd]                            # [Td, HD]
        denom = acc[:, hd:]                            # [Td, H]
        denom = jnp.where(denom > 0, denom, 1.0)       # zero-in-degree dst -> 0 output
        inv = pl.reciprocal(denom, approx=True)        # EUP slot, effectively free
        inv_full = jnp.dot(inv, expand_ref[...],       # broadcast heads across D lanes
                           preferred_element_type=jnp.float32)
        o_ref[...] = (numer * inv_full).astype(o_ref.dtype)


def hetgcn_attention_forward(feat_src, feat_dst, adj, attn_l,
                             num_heads, in_size, negative_slope=0.2,
                             residual=False, dst_tile=None, src_tile=None,
                             compute_dtype=jnp.bfloat16):
    """feat_src: [N_src, H*D], feat_dst: [N_dst, H*D], adj: [N_dst, N_src] (0/1),
    attn_l: [1, H, D].  Returns [N_dst, H*D] in feat_src.dtype."""
    n_src, hd = feat_src.shape
    n_dst = adj.shape[0]
    H, D = num_heads, in_size
    assert hd == H * D
    out_dtype = feat_src.dtype

    # ---- Source-only work, hoisted out of the kernel (identical for every
    #      dst tile; plain XLA, O(Ns*HD)). ----
    h = feat_src.astype(jnp.float32).reshape(n_src, H, D)
    al = attn_l.reshape(1, H, D).astype(jnp.float32)
    el = jnp.sum(h * al, axis=-1)                           # [Ns, H]
    e = jnp.where(el > 0, el, negative_slope * el)          # leaky_relu
    # The attention logit depends only on the source node, so a single shared
    # per-head max is enough for stability and cancels exactly in the softmax
    # ratio.  (Differs from the per-dst max only through exp() underflow for
    # neighborhoods whose logits are ~80 below the global max - negligible for
    # leaky_relu logits of modest scale.)
    m = jnp.max(e, axis=0, keepdims=True)                   # [1, H]
    w = jnp.exp(e - m)                                      # [Ns, H]
    s = (w[:, :, None] * h).reshape(n_src, hd)              # weighted messages
    # Fused RHS: last H lanes carry the softmax denominator terms.
    rhs = jnp.concatenate([s, w], axis=-1).astype(compute_dtype)   # [Ns, HD+H]

    # Compressed adjacency operand; the kernel upcasts right before the matmul.
    adj_i8 = (adj != 0).astype(jnp.int8)                    # [Nd, Ns]

    # One-hot head -> lane expansion used only in the finalize step.
    expand = jnp.kron(jnp.eye(H, dtype=jnp.float32),
                      jnp.ones((1, D), jnp.float32))        # [H, HD]

    # ---- Tiling ------------------------------------------------------------
    if dst_tile is None:
        if n_dst <= 64:
            dst_tile = n_dst                                # tiny graph: one tile
        elif n_dst <= 1024:
            # >=2 dst tiles so the "parallel" axis shards across both v7x TCs.
            dst_tile = _round_up(pl.cdiv(n_dst, 2), 32)
        else:
            dst_tile = 512
    dst_tile = min(dst_tile, n_dst)

    if src_tile is None:
        src_tile = n_src if n_src <= 1024 else 1024
    if src_tile >= n_src:
        src_tile = n_src                                    # single src step
    else:
        src_tile = min(_round_up(src_tile, 128), n_src)     # lane constraint on adj

    # Zero-pad the src axis so every src tile is full (zero adj columns / zero
    # rhs rows contribute nothing to numerator or denominator -> exact).
    n_src_pad = _round_up(n_src, src_tile) if src_tile < n_src else n_src
    if n_src_pad != n_src:
        rhs = jnp.pad(rhs, ((0, n_src_pad - n_src), (0, 0)))
        adj_i8 = jnp.pad(adj_i8, ((0, 0), (0, n_src_pad - n_src)))

    grid = (pl.cdiv(n_dst, dst_tile), n_src_pad // src_tile)

    kernel = functools.partial(_hetgcn_aggregate_kernel, hd=hd)

    rst = pl.pallas_call(
        kernel,
        out_shape=jax.ShapeDtypeStruct((n_dst, hd), out_dtype),
        grid_spec=pltpu.PrefetchScalarGridSpec(
            num_scalar_prefetch=0,
            grid=grid,
            in_specs=[
                pl.BlockSpec((src_tile, hd + H), lambda i, k: (k, 0)),   # fused rhs stripe
                pl.BlockSpec((dst_tile, src_tile), lambda i, k: (i, k)), # int8 adj tile
                pl.BlockSpec((H, hd), lambda i, k: (0, 0)),              # tiny expand
            ],
            out_specs=pl.BlockSpec((dst_tile, hd), lambda i, k: (i, 0)),
            scratch_shapes=[pltpu.VMEM((dst_tile, hd + H), jnp.float32)],
        ),
        compiler_params=pltpu.CompilerParams(
            dimension_semantics=("parallel", "arbitrary"),
            vmem_limit_bytes=_vmem_limit_bytes()),
    )(rhs, adj_i8, expand)

    if residual:
        rst = rst + feat_dst.astype(out_dtype)
    return rst


def _reference(feat_src, adj, attn_l, num_heads, in_size, negative_slope):
    """Pure-JAX reference of the dense attention aggregation (matches the module)."""
    n_src = feat_src.shape[0]
    h = feat_src.reshape(n_src, num_heads, in_size)
    el = jnp.sum(h * attn_l, axis=-1)                           # [Ns, H]
    e = jnp.where(el > 0, el, negative_slope * el)
    mask = adj[:, :, None] > 0                                  # [Nd, Ns, 1]
    s = jnp.where(mask, e[None, :, :], NEG_INF)                 # [Nd, Ns, H]
    m = jnp.max(s, axis=1, keepdims=True)
    p = jnp.exp(s - m) * mask
    denom = jnp.sum(p, axis=1, keepdims=True)
    denom = jnp.where(denom > 0, denom, 1.0)
    a = p / denom
    out = jnp.einsum('dsh,shf->dhf', a, h)                      # [Nd, H, D]
    return out.reshape(adj.shape[0], num_heads * in_size)


if __name__ == "__main__":
    # small shapes consistent with the module (H*D = 128 lane-dense output)
    num_heads = 8
    in_size = 16
    n_src, n_dst = 256, 128
    negative_slope = 0.2

    key = jax.random.PRNGKey(0)
    k1, k2, k3, k4 = jax.random.split(key, 4)

    feat_src = jax.random.normal(k1, (n_src, num_heads * in_size), jnp.float32)
    feat_dst = jax.random.normal(k2, (n_dst, num_heads * in_size), jnp.float32)

    # deterministic xavier_normal_(gain=1.414) init for attn_l of shape (1, H, D)
    fan_in, fan_out = in_size, num_heads
    std = 1.414 * math.sqrt(2.0 / (fan_in + fan_out))
    attn_l = std * jax.random.normal(k3, (1, num_heads, in_size), jnp.float32)

    # deterministic random bipartite graph; every dst gets >= 1 in-edge
    adj = (jax.random.uniform(k4, (n_dst, n_src)) < 0.25).astype(jnp.float32)
    adj = adj.at[:, 0].set(1.0)

    fwd = jax.jit(functools.partial(
        hetgcn_attention_forward,
        num_heads=num_heads, in_size=in_size, negative_slope=negative_slope,
        src_tile=128))   # exercise the src-axis accumulation path (grid = 2 x 2)

    rst = fwd(feat_src, feat_dst, adj, attn_l)
    rst = jax.block_until_ready(rst)

    ref = _reference(feat_src, adj, attn_l, num_heads, in_size, negative_slope)
    assert rst.shape == (n_dst, num_heads * in_size)
    # bf16 messages / weights on the MXU + approx reciprocal -> loosened tolerance
    assert jnp.allclose(rst, ref, atol=3e-2, rtol=3e-2), "mismatch vs reference"

    print("KERNEL_OK")
</pallas_src>

<mosaic_0001>
module attributes {stable_mosaic.version = 11 : i64} {
  func.func @_hetgcn_aggregate_kernel(%arg0: i32, %arg1: i32, %arg2: memref<128x136xbf16, #tpu.memory_space<vmem>>, %arg3: memref<64x128xi8, #tpu.memory_space<vmem>>, %arg4: memref<8x128xf32, #tpu.memory_space<vmem>>, %arg5: memref<64x128xf32, #tpu.memory_space<vmem>>, %arg6: memref<64x136xf32, #tpu.memory_space<vmem>>) attributes {dimension_semantics = [#tpu.dimension_semantics<parallel>, #tpu.dimension_semantics<arbitrary>], iteration_bounds = array<i64: 2, 2>, scalar_prefetch = 0 : i64, scratch_operands = 1 : i64, tpu.core_type = #tpu.core_type<tc>, window_params = [{transform_indices = @transform_0, window_bounds = array<i64: 128, 136>}, {transform_indices = @transform_1, window_bounds = array<i64: 64, 128>}, {pipeline_mode = #tpu.pipeline_mode<synchronous>, transform_indices = @transform_2, window_bounds = array<i64: 8, 128>}, {transform_indices = @transform_3, window_bounds = array<i64: 64, 128>}]} {
    %c0_i32 = arith.constant 0 : i32
    %0 = arith.cmpi eq, %arg1, %c0_i32 : i32
    %1 = arith.extui %0 : i1 to i32
    %c0_i32_0 = arith.constant 0 : i32
    %2 = arith.cmpi ne, %1, %c0_i32_0 : i32
    scf.if %2 {
      %cst_9 = arith.constant 0.000000e+00 : f32
      %13 = vector.broadcast %cst_9 : f32 to vector<64x136xf32>
      %c0_10 = arith.constant 0 : index
      %c0_11 = arith.constant 0 : index
      %14 = vector.load %arg6[%c0_10, %c0_11] : memref<64x136xf32, #tpu.memory_space<vmem>>, vector<64x136xf32>
      tpu.vector_store %arg6[%c0_10, %c0_11], %13 {strides = array<i32>} : memref<64x136xf32, #tpu.memory_space<vmem>>, vector<64x136xf32>,
    } else {
    }
    %c0 = arith.constant 0 : index
    %c0_1 = arith.constant 0 : index
    %3 = vector.load %arg3[%c0, %c0_1] : memref<64x128xi8, #tpu.memory_space<vmem>>, vector<64x128xi8>
    %4 = arith.sitofp %3 : vector<64x128xi8> to vector<64x128xbf16>
    %c0_2 = arith.constant 0 : index
    %c0_3 = arith.constant 0 : index
    %5 = vector.load %arg6[%c0_2, %c0_3] : memref<64x136xf32, #tpu.memory_space<vmem>>, vector<64x136xf32>
    %c0_4 = arith.constant 0 : index
    %c0_5 = arith.constant 0 : index
    %6 = vector.load %arg2[%c0_4, %c0_5] : memref<128x136xbf16, #tpu.memory_space<vmem>>, vector<128x136xbf16>
    %cst = arith.constant dense<0.000000e+00> : vector<64x136xf32>
    %7 = tpu.matmul %4, %6, %cst {dimension_numbers = #tpu.dot_dimension_numbers<[1], [0], [0], [1], [0, 0, 1, 1], [], []>} : vector<64x128xbf16>, vector<128x136xbf16>, vector<64x136xf32> -> vector<64x136xf32>
    %8 = arith.addf %5, %7 : vector<64x136xf32>
    %c0_6 = arith.constant 0 : index
    %c0_7 = arith.constant 0 : index
    %9 = vector.load %arg6[%c0_6, %c0_7] : memref<64x136xf32, #tpu.memory_space<vmem>>, vector<64x136xf32>
    tpu.vector_store %arg6[%c0_6, %c0_7], %8 {strides = array<i32>} : memref<64x136xf32, #tpu.memory_space<vmem>>, vector<64x136xf32>,
    %c1_i32 = arith.constant 1 : i32
    %10 = arith.cmpi eq, %arg1, %c1_i32 : i32
    %11 = arith.extui %10 : i1 to i32
    %c0_i32_8 = arith.constant 0 : i32
    %12 = arith.cmpi ne, %11, %c0_i32_8 : i32
    scf.if %12 {
      %c0_9 = arith.constant 0 : index
      %c0_10 = arith.constant 0 : index
      %13 = vector.load %arg6[%c0_9, %c0_10] : memref<64x136xf32, #tpu.memory_space<vmem>>, vector<64x136xf32>
      %14 = vector.extract_strided_slice %13 {offsets = [0, 0], sizes = [64, 128], strides = [1, 1]} : vector<64x136xf32> to vector<64x128xf32>
      %15 = vector.extract_strided_slice %13 {offsets = [0, 128], sizes = [64, 8], strides = [1, 1]} : vector<64x136xf32> to vector<64x8xf32>
      %cst_11 = arith.constant 0.000000e+00 : f32
      %16 = vector.broadcast %cst_11 : f32 to vector<64x8xf32>
      %17 = arith.cmpf ogt, %15, %16 : vector<64x8xf32>
      %cst_12 = arith.constant 1.000000e+00 : f32
      %18 = vector.broadcast %cst_12 : f32 to vector<64x8xf32>
      %19 = arith.select %17, %15, %18 : vector<64x8xi1>, vector<64x8xf32>
      %20 = tpu.reciprocal %19 {approx = true} : vector<64x8xf32> -> vector<64x8xf32>
      %c0_13 = arith.constant 0 : index
      %c0_14 = arith.constant 0 : index
      %21 = vector.load %arg4[%c0_13, %c0_14] : memref<8x128xf32, #tpu.memory_space<vmem>>, vector<8x128xf32>
      %cst_15 = arith.constant dense<0.000000e+00> : vector<64x128xf32>
      %22 = tpu.matmul %20, %21, %cst_15 {dimension_numbers = #tpu.dot_dimension_numbers<[1], [0], [0], [1], [0, 0, 1, 1], [], []>} : vector<64x8xf32>, vector<8x128xf32>, vector<64x128xf32> -> vector<64x128xf32>
      %23 = arith.mulf %14, %22 : vector<64x128xf32>
      %c0_16 = arith.constant 0 : index
      %c0_17 = arith.constant 0 : index
      %24 = vector.load %arg5[%c0_16, %c0_17] : memref<64x128xf32, #tpu.memory_space<vmem>>, vector<64x128xf32>
      tpu.vector_store %arg5[%c0_16, %c0_17], %23 {strides = array<i32>} : memref<64x128xf32, #tpu.memory_space<vmem>>, vector<64x128xf32>,
    } else {
    }
    return
  }
  func.func @transform_0(%arg0: i32, %arg1: i32) -> (i32, i32) {
    %c0_i32 = arith.constant 0 : i32
    %c0_i32_0 = arith.constant 0 : i32
    return %arg1, %c0_i32 : i32, i32
  }
  func.func @transform_1(%arg0: i32, %arg1: i32) -> (i32, i32) {
    %c0_i32 = arith.constant 0 : i32
    return %arg0, %arg1 : i32, i32
  }
  func.func @transform_2(%arg0: i32, %arg1: i32) -> (i32, i32) {
    %c0_i32 = arith.constant 0 : i32
    %c0_i32_0 = arith.constant 0 : i32
    %c0_i32_1 = arith.constant 0 : i32
    return %c0_i32, %c0_i32_0 : i32, i32
  }
  func.func @transform_3(%arg0: i32, %arg1: i32) -> (i32, i32) {
    %c0_i32 = arith.constant 0 : i32
    %c0_i32_0 = arith.constant 0 : i32
    return %arg0, %c0_i32 : i32, i32
  }
}

</mosaic_0001>

<bundles_post_ra>
// kernel: hetgcn_attention_forward.1
= control target key start
LH: loop header
LB: loop body
LE: loop exit
PB: predicated region body
PF: predicated region fallthrough
CT: control target
= control target key end

     0   :  { %8 = vsyncpa [#allocation5], 0  ;;  %s1393_s0 = inlined_call_operand.vmem [shape: bf16[256,136], index: 0, kind: input, shape index: {}]   ;;  %s1394_s1 = inlined_call_operand.vmem [shape: s8[128,256], index: 1, kind: input, shape index: {}]   ;;  %s1395_s2 = inlined_call_operand.vmem [shape: f32[8,128], index: 2, kind: input, shape index: {}]   ;;  %s1396_s3 = inlined_call_operand.hbm [shape: f32[128,128], index: 3, kind: output, shape index: {}]  }
   0x1   :  { %10 = vsyncpa [#allocation5 + $0x1], 0  ;;  %s1151_s12 = smov 0   ;;  %s1153_s13 = smov 0  }
   0x2   :  { %s1155_s14 = smov 0   ;;  %s1157_s15 = smov 0  }
   0x3   :  { %s1159_s16 = smov 0   ;;  %s1161_s17 = smov 0  }
   0x4   :  { %s1163_s18 = smov 0   ;;  %s1165_s19 = smov 0  }
   0x5   :  { %s1167_s20 = smov 0   ;;  %s1169_s21 = smov 0  }
   0x6 LB: > { %s794_s22 = sadd.s32 4294967295, %s1124_s21   ;;  %s795_s23 = sadd.s32 4294967294, %s1124_s21   ;;  %s1124_s21 = sphi %s1169_s21, %s16_s21   ;;  %s1120_s20 = sphi %s1167_s20, %s1408_s20   ;;  %s1116_s19 = sphi %s1165_s19, %s1407_s19   ;;  %s1112_s18 = sphi %s1163_s18, %s1406_s18   ;;  %s1108_s17 = sphi %s1161_s17, %s1405_s17   ;;  %s1104_s16 = sphi %s1159_s16, %s1404_s16   ;;  %s1100_s15 = sphi %s1157_s15, %s1403_s15   ;;  %s1096_s14 = sphi %s1155_s14, %s1402_s14   ;;  %s1092_s13 = sphi %s1153_s13, %s1401_s13   ;;  %s1088_s12 = sphi %s1151_s12, %s1400_s12  }
   0x7   : > { %s25_s24 = sadd.s32 1, %s1116_s19  ;;  %s28_s25 = sadd.s32 1, %s1120_s20 }
   0x8   : > { %p26_p0 = scmp.ge.s32.totalorder %s25_s24, 2  ;;  %s63_s26 = sadd.s32 1, %s1104_s16 }
   0x9   : > { %p70_p1 = scmp.ne.s32.totalorder %s1104_s16, %s1100_s15  ;;  %p71_p2 = scmp.eq.s32.totalorder %s1124_s21, 0 }
   0xa   : > { %s1410_s24 = smov (%p26_p0, %s25_s24), 0  ;;  %s1412_s25 = smov (!%p26_p0, %s28_s25), %s1120_s20 }
   0xb   : > { %s59_s27 = ssub.s32 %s1116_s19, %s1410_s24  ;;  %p1214_p3 = por %p71_p2, %p70_p1 }
   0xc   : > { %p30_p4 = scmp.ge.s32.totalorder %s1412_s25, 2  ;;  %s110_s29 = sadd.s32 1, %s1096_s14 }
   0xd   : > { %p120_p5 = scmp.ne.s32.totalorder %s1096_s14, %s1092_s13  ;;  %p121_p6 = scmp.eq.s32.totalorder %s794_s22, 3 }
   0xe   : > { %s1414_s25 = smov (%p30_p4, %s1412_s25), 0  ;;  %p126_p8 = scmp.ne.s32.totalorder %s1092_s13, %s1088_s12 }
   0xf   : > { %p1223_p7 = por %p121_p6, %p120_p5  ;;  %s58_s4 = ssub.s32 %s1120_s20, %s1414_s25 }
  0x10   : > { %p127_p9 = scmp.eq.s32.totalorder %s795_s23, 3  ;;  %s60_s5 = sor.u32 %s59_s27, %s58_s4 }
  0x11   : > { %p108_p10 = scmp.eq.s32.totalorder %s58_s4, 0  ;;  %p61_p11 = scmp.eq.s32.totalorder %s60_s5, 0 }
  0x12   : > { %p1231_p12 = por %p127_p9, %p126_p8  ;;  %p797_p13 = scmp.ge.s32.totalorder %s1124_s21, 4 }
  0x13   : > { %s1236_s7 = scalar_select %p108_p10, %s1096_s14, %s110_s29  }
  0x14   : > { %s1239_s8 = scalar_select %p61_p11, %s1104_s16, %s63_s26  }
  0x15   : > { %146 = sbr.rel (%p797_p13) target bundleno = 35 (0x23), region = 20 }
  0x1c   : > { %159 = sbr.rel (!%p1214_p3) target bundleno = 35 (0x23), region = 28  ;;  %s161_s9 = sand.u32 (%p1214_p3), 1, %s1104_s16  }
  0x1d   : > { %s839_s10 = sshll.u32 (%p1214_p3), %s1120_s20, 2  ;;  %s798_s11 = sshll.u32 (%p1214_p3), %s161_s9, 4 }
  0x1e   : > { %s166_s22 = sadd.s32 (%p1214_p3), %s1116_s19, %s839_s10  ;;  %s163_s26 = scalar_lea.vmem (%p1214_p3), [#allocation3], %s798_s11 }
  0x1f   : > { %s801_s23 = sshll.u32 (%p1214_p3), %s166_s22, 3 }
  0x20   : > { %s168_s29 = scalar_lea.vmem (%p1214_p3), %s1394_s1, %s801_s23 }
  0x21   : > { %v198_v0 = vld [vmem:[%s168_s29] sm:$0xff] (%p1214_p3)  ;;  %v200_v1 = vld [vmem:[%s168_s29 + $0x10] sm:$0xff] (%p1214_p3) }
  0x22   : > { %199 = vst [vmem:[%s163_s26] sm:$0xff] (%p1214_p3), %v198_v0  ;;  %201 = vst [vmem:[%s163_s26 + $0x8] sm:$0xff] (%p1214_p3), %v200_v1 }
  0x23 PF: > { %p802_p0 = scmp.ge.s32.totalorder %s1124_s21, 1  ;;  %p206_p1 = scmp.lt.s32.totalorder %s1124_s21, 5 }
  0x25   : > { %p207_p2 = pnand %p802_p0, %p206_p1 }
  0x26   : > { %s213_s28 = sand.u32 (!%p207_p2), 1, %s1100_s15   ;;  %s239_s5 = sand.u32 (!%p207_p2), 1, %s1092_s13  }
  0x27   : > { %210 = sbr.rel (%p207_p2) target bundleno = 578 (0x242), region = 66  ;;  %s1254_s9 = sshll.u32 (!%p207_p2), %s213_s28, 4 }
  0x28   : > { %s804_s10 = sshll.u32 (!%p207_p2), %s239_s5, 6  ;;  %s805_s11 = sshll.u32 (!%p207_p2), %s1108_s17, 4 }
  0x29   : > { %p243_p3 = scmp.lt.s32.totalorder (!%p207_p2), %s805_s11, 31  ;;  %s215_s29 = scalar_lea.vmem (!%p207_p2), [#allocation3], %s1254_s9 }
  0x2a   : > { %s1265_s26 = scalar_lea.vmem (!%p207_p2), [#allocation4], %s804_s10  ;;  %p808_p4 = scmp.ne.s32.totalorder (!%p207_p2), %s1108_s17, 0 }
  0x2e   : > { %s1416_s11 = smov (!%p243_p3, %s805_s11), 31  ;;  %255 = sbr.rel (%p808_p4) target bundleno = 56 (0x38), region = 74 }
  0x2f   : > { %s840_s22 = sshll.u32 %s1416_s11, 3  ;;  %vm257_vm0 = vcmask (!%p808_p4), 64512   ;;  %v1126_v2 = vmov (!%p808_p4), 0.0  }
  0x30   : > { %s1262_s4 = scalar_lea.vmem %s1393_s0, %s840_s22  ;;  %256 = vst [vmem:[#allocation2] sm:$0xff] (!%p808_p4), %v1126_v2  ;;  %259 = vst [vmem:[#allocation2 + $0x10] sm:$0xff] (!%p808_p4), %v1126_v2 }
  0x31   : > { %261 = vst [vmem:[#allocation2 + $0x20] sm:$0xff] (!%p808_p4), %v1126_v2  ;;  %263 = vst [vmem:[#allocation2 + $0x30] sm:$0xff] (!%p808_p4), %v1126_v2 }
  0x32   : > { %265 = vst [vmem:[#allocation2 + $0x40] sm:$0xff] (!%p808_p4), %v1126_v2  ;;  %267 = vst [vmem:[#allocation2 + $0x50] sm:$0xff] (!%p808_p4), %v1126_v2 }
  0x33   : > { %269 = vst [vmem:[#allocation2 + $0x60] sm:$0xff] (!%p808_p4), %v1126_v2  ;;  %271 = vst [vmem:[#allocation2 + $0x70] sm:$0xff] (!%p808_p4), %v1126_v2 }
  0x34   : > { %258 = vst.msk [vmem:[#allocation2 + $0x8] sm:$0xff] (!%p808_p4), %vm257_vm0, %v1126_v2  ;;  %260 = vst.msk [vmem:[#allocation2 + $0x18] sm:$0xff] (!%p808_p4), %vm257_vm0, %v1126_v2 }
  0x35   : > { %262 = vst.msk [vmem:[#allocation2 + $0x28] sm:$0xff] %vm257_vm0, %v1126_v2  ;;  %264 = vst.msk [vmem:[#allocation2 + $0x38] sm:$0xff] %vm257_vm0, %v1126_v2 }
  0x36   : > { %266 = vst.msk [vmem:[#allocation2 + $0x48] sm:$0xff] %vm257_vm0, %v1126_v2  ;;  %268 = vst.msk [vmem:[#allocation2 + $0x58] sm:$0xff] %vm257_vm0, %v1126_v2 }
  0x37   : > { %270 = vst.msk [vmem:[#allocation2 + $0x68] sm:$0xff] %vm257_vm0, %v1126_v2  ;;  %272 = vst.msk [vmem:[#allocation2 + $0x78] sm:$0xff] %vm257_vm0, %v1126_v2 }
  0x38 PF: > { %v974_v3 = vld [vmem:[%s1262_s4 + $0x4] ss:$8 sps:$4 sm:$0xff]   ;;  %v976_v4 = vld [vmem:[%s1262_s4] ss:$8 sps:$4 sm:$0xff]   ;;  %v1127_v5 = vmov 0   ;;  %vm481_vm1 = vcmask 64512  }
  0x39   : > { %423 = vmatprep.mubr.bf16.mxu0 %v1127_v5  ;;  %443 = vmatprep.mubr.bf16.mxu1 %v1127_v5  ;;  %v977_v6 = vld [vmem:[%s1262_s4 + $0x14] ss:$8 sps:$4 sm:$0xff]   ;;  %v979_v7 = vld [vmem:[%s1262_s4 + $0x10] ss:$8 sps:$4 sm:$0xff]   ;;  %v980_v8 = vld [vmem:[%s1262_s4 + $0x24] ss:$8 sps:$4 sm:$0xff]  }
  0x3a   : > { %391 = vmatprep.subr.bf16.mxu0 %v974_v3  ;;  %865 = vmatprep.subr.bf16.mxu1 %v974_v3  ;;  %v982_v9 = vld [vmem:[%s1262_s4 + $0x20] ss:$8 sps:$4 sm:$0xff]   ;;  %v983_v10 = vld [vmem:[%s1262_s4 + $0x34] ss:$8 sps:$4 sm:$0xff]   ;;  %v985_v11 = vld [vmem:[%s1262_s4 + $0x30] ss:$8 sps:$4 sm:$0xff]  }
  0x3b   : > { %392 = vmatpush1.bf16.msra.mxu0 %v976_v4  ;;  %873 = vmatpush1.bf16.msra.mxu1 %v976_v4  ;;  %v986_v12 = vld [vmem:[%s1262_s4 + $0x44] ss:$8 sps:$4 sm:$0xff]   ;;  %v988_v13 = vld [vmem:[%s1262_s4 + $0x40] ss:$8 sps:$4 sm:$0xff]   ;;  %v989_v14 = vld [vmem:[%s1262_s4 + $0x54] ss:$8 sps:$4 sm:$0xff]  }
  0x3c   : > { %393 = vmatprep.subr.bf16.mxu0 %v977_v6  ;;  %866 = vmatprep.subr.bf16.mxu1 %v977_v6  ;;  %v991_v15 = vld [vmem:[%s1262_s4 + $0x50] ss:$8 sps:$4 sm:$0xff]   ;;  %v992_v16 = vld [vmem:[%s1262_s4 + $0x64] ss:$8 sps:$4 sm:$0xff]   ;;  %v994_v17 = vld [vmem:[%s1262_s4 + $0x60] ss:$8 sps:$4 sm:$0xff]  }
  0x3d   : > { %v995_v18 = vld [vmem:[%s1262_s4 + $0x74] ss:$8 sps:$4 sm:$0xff]   ;;  %v997_v19 = vld [vmem:[%s1262_s4 + $0x70] ss:$8 sps:$4 sm:$0xff]   ;;  %v279_v26 = vld [vmem:[#allocation2] sm:$0xff]  ;;  %p825_p5 = scmp.ne.s32.totalorder %s1108_s17, 1 }
  0x3e   : > { %v273_v20 = vld [vmem:[%s215_s29] sm:$0xff]  ;;  %v274_v21 = vld [vmem:[%s215_s29 + $0x8] sm:$0xff] }
  0x3f   : > { %394 = vmatpush1.bf16.msra.mxu0 %v979_v7  ;;  %874 = vmatpush1.bf16.msra.mxu1 %v979_v7  ;;  %v275_v22 = vunpack.c.l.s8.bf16 %v273_v20  ;;  %v277_v23 = vunpack.c.l.s8.bf16 %v274_v21  ;;  %v276_v24 = vunpack.c.h.s8.bf16 %v273_v20  ;;  %v278_v25 = vunpack.c.h.s8.bf16 %v274_v21  ;;  %v287_v27 = vld [vmem:[#allocation2 + $0x40] sm:$0xff]  ;;  %v280_v28 = vld [vmem:[#allocation2 + $0x8] sm:$0xff]  ;;  %v281_v32 = vld [vmem:[#allocation2 + $0x10] sm:$0xff] }
  0x40   : > { %395 = vmatprep.subr.bf16.mxu0 %v980_v8  ;;  %867 = vmatprep.subr.bf16.mxu1 %v980_v8  ;;  %v288_v29 = vld [vmem:[#allocation2 + $0x48] sm:$0xff]  ;;  %v289_v33 = vld [vmem:[#allocation2 + $0x50] sm:$0xff]  ;;  %v282_v38 = vld [vmem:[#allocation2 + $0x18] sm:$0xff] }
  0x41   : > { %v290_v39 = vld [vmem:[#allocation2 + $0x58] sm:$0xff]  ;;  %v283_v50 = vld [vmem:[#allocation2 + $0x20] sm:$0xff]  ;;  %v284_v52 = vld [vmem:[#allocation2 + $0x28] sm:$0xff] }
  0x42   : > { %v291_v51 = vld [vmem:[#allocation2 + $0x60] sm:$0xff]  ;;  %v292_v53 = vld [vmem:[#allocation2 + $0x68] sm:$0xff]  ;;  %v285_v56 = vld [vmem:[#allocation2 + $0x30] sm:$0xff] }
  0x43   : > { %396 = vmatpush1.bf16.msra.mxu0 %v982_v9  ;;  %875 = vmatpush1.bf16.msra.mxu1 %v982_v9  ;;  %v293_v57 = vld [vmem:[#allocation2 + $0x70] sm:$0xff]  ;;  %v286_v62 = vld [vmem:[#allocation2 + $0x38] sm:$0xff] }
  0x44   : > { %397 = vmatprep.subr.bf16.mxu0 %v983_v10  ;;  %868 = vmatprep.subr.bf16.mxu1 %v983_v10  ;;  %v294_v63 = vld [vmem:[#allocation2 + $0x78] sm:$0xff]  ;;  %v541_v10 = vld [vmem:[%s1395_s2] sm:$0xff] (!%p825_p5) }
  0x47   : > { %398 = vmatpush1.bf16.msra.mxu0 %v985_v11  ;;  %876 = vmatpush1.bf16.msra.mxu1 %v985_v11 }
  0x48   : > { %399 = vmatprep.subr.bf16.mxu0 %v986_v12  ;;  %869 = vmatprep.subr.bf16.mxu1 %v986_v12 }
  0x4b   : > { %400 = vmatpush1.bf16.msra.mxu0 %v988_v13  ;;  %877 = vmatpush1.bf16.msra.mxu1 %v988_v13 }
  0x4c   : > { %401 = vmatprep.subr.bf16.mxu0 %v989_v14  ;;  %870 = vmatprep.subr.bf16.mxu1 %v989_v14 }
  0x4f   : > { %402 = vmatpush1.bf16.msra.mxu0 %v991_v15  ;;  %878 = vmatpush1.bf16.msra.mxu1 %v991_v15 }
  0x50   : > { %403 = vmatprep.subr.bf16.mxu0 %v992_v16  ;;  %871 = vmatprep.subr.bf16.mxu1 %v992_v16 }
  0x53   : > { %404 = vmatpush1.bf16.msra.mxu0 %v994_v17  ;;  %879 = vmatpush1.bf16.msra.mxu1 %v994_v17 }
  0x54   : > { %405 = vmatprep.subr.bf16.mxu0 %v995_v18  ;;  %872 = vmatprep.subr.bf16.mxu1 %v995_v18 }
  0x57   : > { %406 = vmatpush1.bf16.msra.mxu0 %v997_v19  ;;  %880 = vmatpush1.bf16.msra.mxu1 %v997_v19 }
  0x58   : > { %851 = vmatprep.subr.mxu0 (!%p825_p5), %v541_v10  ;;  %881 = vmatprep.subr.mxu1 (!%p825_p5), %v541_v10 }
  0x5a   : > { %424 = vmatmul.mubr.bf16.vlgmr.msra.gmra.mrb[0].mxu0 %v275_v22  ;;  %444 = vmatmul.mubr.bf16.vlgmr.msra.gmra.mrb[0].mxu1 %v277_v23 }
  0x5b   : > { %433 = vmatprep.mubr.bf16.mxu0 %v1127_v5  ;;  %453 = vmatprep.mubr.bf16.mxu1 %v1127_v5 }
  0x5c   : > { %852 = vmatpush3.msra.mxu0 (!%p825_p5), %v541_v10  ;;  %882 = vmatpush3.msra.mxu1 (!%p825_p5), %v541_v10 }
  0x62   : > { %434 = vmatmul.mubr.bf16.gmra.mrb[4].mxu0 %v276_v24  ;;  %454 = vmatmul.mubr.bf16.gmra.mrb[4].mxu1 %v278_v25 }
 0x12d   : > { %v425_v30 = vpop.f32.mrb[0].mxu0  ;;  %v445_v31 = vpop.f32.mrb[0].mxu1 }
 0x12e   : > { %v464_v34 = vadd.f32 %v425_v30, %v279_v26  ;;  %v472_v35 = vadd.f32 %v445_v31, %v287_v27  ;;  %v427_v36 = vpop.f32.mrb[1].mxu0  ;;  %v447_v37 = vpop.f32.mrb[1].mxu1 }
 0x12f   : > { %v465_v40 = vadd.f32 %v427_v36, %v280_v28  ;;  %v473_v41 = vadd.f32 %v447_v37, %v288_v29  ;;  %v429_v42 = vpop.f32.mrb[2].mxu0  ;;  %v449_v43 = vpop.f32.mrb[2].mxu1 }
 0x130   : > { %480 = vst [vmem:[#allocation2] sm:$0xff] %v464_v34  ;;  %489 = vst [vmem:[#allocation2 + $0x40] sm:$0xff] %v472_v35  ;;  %v466_v44 = vadd.f32 %v429_v42, %v281_v32  ;;  %v474_v45 = vadd.f32 %v449_v43, %v289_v33  ;;  %v431_v46 = vpop.f32.mrb[3].mxu0  ;;  %v451_v47 = vpop.f32.mrb[3].mxu1 }
 0x131   : > { %482 = vst.msk [vmem:[#allocation2 + $0x8] sm:$0xff] %vm481_vm1, %v465_v40  ;;  %490 = vst.msk [vmem:[#allocation2 + $0x48] sm:$0xff] %vm481_vm1, %v473_v41  ;;  %v467_v48 = vadd.f32 %v431_v46, %v282_v38  ;;  %v475_v49 = vadd.f32 %v451_v47, %v290_v39 }
 0x132   : > { %483 = vst [vmem:[#allocation2 + $0x10] sm:$0xff] %v466_v44  ;;  %491 = vst [vmem:[#allocation2 + $0x50] sm:$0xff] %v474_v45 }
 0x133   : > { %484 = vst.msk [vmem:[#allocation2 + $0x18] sm:$0xff] %vm481_vm1, %v467_v48  ;;  %492 = vst.msk [vmem:[#allocation2 + $0x58] sm:$0xff] %vm481_vm1, %v475_v49 }
 0x135   : > { %v435_v54 = vpop.f32.mrb[4].mxu0  ;;  %v455_v55 = vpop.f32.mrb[4].mxu1  ;;  %500 = sbr.rel (%p825_p5) target bundleno = 553 (0x229), region = 78 }
 0x136   : > { %v468_v58 = vadd.f32 %v435_v54, %v283_v50  ;;  %v476_v59 = vadd.f32 %v455_v55, %v291_v51  ;;  %v437_v60 = vpop.f32.mrb[5].mxu0  ;;  %v457_v61 = vpop.f32.mrb[5].mxu1 }
 0x137   : > { %v469_v0 = vadd.f32 %v437_v60, %v284_v52  ;;  %v477_v1 = vadd.f32 %v457_v61, %v292_v53  ;;  %v439_v2 = vpop.f32.mrb[6].mxu0  ;;  %v459_v3 = vpop.f32.mrb[6].mxu1  ;;  %v501_v37 = vld [vmem:[#allocation2] sm:$0xff] (!%p825_p5) }
 0x138   : > { %485 = vst [vmem:[#allocation2 + $0x20] sm:$0xff] %v468_v58  ;;  %493 = vst [vmem:[#allocation2 + $0x60] sm:$0xff] %v476_v59  ;;  %v470_v4 = vadd.f32 %v439_v2, %v285_v56  ;;  %v478_v5 = vadd.f32 %v459_v3, %v293_v57  ;;  %v441_v6 = vpop.f32.mrb[7].mxu0  ;;  %v461_v7 = vpop.f32.mrb[7].mxu1  ;;  %v502_v11 = vld [vmem:[#allocation2 + $0x8] sm:$0xff] (!%p825_p5)  ;;  %v509_v39 = vld [vmem:[#allocation2 + $0x40] sm:$0xff] (!%p825_p5) }
 0x139   : > { %486 = vst.msk [vmem:[#allocation2 + $0x28] sm:$0xff] %vm481_vm1, %v469_v0  ;;  %494 = vst.msk [vmem:[#allocation2 + $0x68] sm:$0xff] %vm481_vm1, %v477_v1  ;;  %v471_v8 = vadd.f32 %v441_v6, %v286_v62  ;;  %v479_v9 = vadd.f32 %v461_v7, %v294_v63  ;;  %v510_v12 = vld [vmem:[#allocation2 + $0x48] sm:$0xff] (!%p825_p5)  ;;  %vm517_vm2 = vcmp.gt.f32.partialorder (!%p825_p5), %v502_v11, 0.0  ;;  %v503_v35 = vld [vmem:[#allocation2 + $0x10] sm:$0xff] (!%p825_p5) }
 0x13a   : > { %487 = vst [vmem:[#allocation2 + $0x30] sm:$0xff] %v470_v4  ;;  %495 = vst [vmem:[#allocation2 + $0x70] sm:$0xff] %v478_v5  ;;  %vm521_vm3 = vcmp.gt.f32.partialorder (!%p825_p5), %v510_v12, 0.0  ;;  %v504_v13 = vld [vmem:[#allocation2 + $0x18] sm:$0xff] (!%p825_p5)  ;;  %v525_v16 = vsel (!%p825_p5), %vm517_vm2, %v502_v11, 1.0  ;;  %v511_v36 = vld [vmem:[#allocation2 + $0x50] sm:$0xff] (!%p825_p5) }
 0x13b   : > { %488 = vst.msk [vmem:[#allocation2 + $0x38] sm:$0xff] %vm481_vm1, %v471_v8  ;;  %496 = vst.msk [vmem:[#allocation2 + $0x78] sm:$0xff] %vm481_vm1, %v479_v9  ;;  %v512_v14 = vld [vmem:[#allocation2 + $0x58] sm:$0xff] (!%p825_p5)  ;;  %v529_v17 = vsel (!%p825_p5), %vm521_vm3, %v510_v12, 1.0  ;;  %vm518_vm4 = vcmp.gt.f32.partialorder (!%p825_p5), %v504_v13, 0.0  ;;  %998 = vrcp.f32 (!%p825_p5), %v525_v16 }
 0x13c   : > { %vm522_vm5 = vcmp.gt.f32.partialorder %v512_v14, 0.0  ;;  %v526_v20 = vsel %vm518_vm4, %v504_v13, 1.0  ;;  %1000 = vrcp.f32 %v529_v17 }
 0x13d   : > { %v530_v21 = vsel %vm522_vm5, %v512_v14, 1.0  ;;  %1002 = vrcp.f32 %v526_v20 }
 0x13e   : > { %1004 = vrcp.f32 %v530_v21 }
 0x13f   : > { %v505_v49 = vld [vmem:[#allocation2 + $0x20] sm:$0xff] }
 0x140   : > { %v506_v15 = vld [vmem:[#allocation2 + $0x28] sm:$0xff]  ;;  %v513_v51 = vld [vmem:[#allocation2 + $0x60] sm:$0xff] }
 0x141   : > { %v514_v18 = vld [vmem:[#allocation2 + $0x68] sm:$0xff]  ;;  %vm519_vm6 = vcmp.gt.f32.partialorder %v506_v15, 0.0  ;;  %v507_v46 = vld [vmem:[#allocation2 + $0x30] sm:$0xff] }
 0x142   : > { %v508_v19 = vld [vmem:[#allocation2 + $0x38] sm:$0xff]  ;;  %v527_v23 = vsel %vm519_vm6, %v506_v15, 1.0  ;;  %vm523_vm7 = vcmp.gt.f32.partialorder %v514_v18, 0.0  ;;  %v515_v48 = vld [vmem:[#allocation2 + $0x70] sm:$0xff] }
 0x143   : > { %v516_v22 = vld [vmem:[#allocation2 + $0x78] sm:$0xff]  ;;  %vm520_vm8 = vcmp.gt.f32.partialorder %v508_v19, 0.0  ;;  %v531_v24 = vsel %vm523_vm7, %v514_v18, 1.0  ;;  %1006 = vrcp.f32 %v527_v23 }
 0x144   : > { %vm524_vm9 = vcmp.gt.f32.partialorder %v516_v22, 0.0  ;;  %v528_v25 = vsel %vm520_vm8, %v508_v19, 1.0  ;;  %1008 = vrcp.f32 %v531_v24 }
 0x145   : > { %v532_v26 = vsel %vm524_vm9, %v516_v22, 1.0  ;;  %1010 = vrcp.f32 %v528_v25  ;;  %v999_v27 = vpop.eup %998 }
 0x146   : > { %1012 = vrcp.f32 %v532_v26  ;;  %v1001_v28 = vpop.eup %1000  ;;  %853 = vmatprep.mubr.msk.f32.mxu0 %vm481_vm1, %v999_v27 }
 0x147   : > { %v1003_v29 = vpop.eup %1002  ;;  %859 = vmatprep.mubr.msk.f32.mxu1 %vm481_vm1, %v1001_v28 }
 0x148   : > { %v1005_v30 = vpop.eup %1004  ;;  %854 = vmatmul.mubr.msk.f32.vlgmr.msra.gmra.mrb[0].mxu0 %vm481_vm1, %v1003_v29 }
 0x149   : > { %860 = vmatmul.mubr.msk.f32.vlgmr.msra.gmra.mrb[0].mxu1 %vm481_vm1, %v1005_v30 }
 0x14d   : > { %v1007_v31 = vpop.eup %1006 }
 0x14e   : > { %v1009_v32 = vpop.eup %1008  ;;  %856 = vmatprep.mubr.msk.f32.mxu0 %vm481_vm1, %v1007_v31 }
 0x14f   : > { %v1011_v33 = vpop.eup %1010  ;;  %862 = vmatprep.mubr.msk.f32.mxu1 %vm481_vm1, %v1009_v32 }
 0x150   : > { %v1013_v34 = vpop.eup %1012  ;;  %857 = vmatmul.mubr.msk.f32.gmra.mrb[2].mxu0 %vm481_vm1, %v1011_v33 }
 0x151   : > { %863 = vmatmul.mubr.msk.f32.gmra.mrb[2].mxu1 %vm481_vm1, %v1013_v34 }
 0x21b   : > { %v855_v38 = vpop.f32.mrb[0].mxu0 }
 0x21c   : > { %v672_v40 = vmul.f32 %v855_v38, %v503_v35  ;;  %v861_v41 = vpop.f32.mrb[0].mxu1  ;;  %v632_v42 = vpop.f32.mrb[1].mxu0 }
 0x21d   : > { %v676_v43 = vmul.f32 %v861_v41, %v511_v36  ;;  %v671_v44 = vmul.f32 %v632_v42, %v501_v37  ;;  %v652_v45 = vpop.f32.mrb[1].mxu1 }
 0x21e   : > { %680 = vst [vmem:[%s1265_s26 + $0x8] sm:$0xff] %v672_v40  ;;  %v675_v47 = vmul.f32 %v652_v45, %v509_v39 }
 0x21f   : > { %684 = vst [vmem:[%s1265_s26 + $0x28] sm:$0xff] %v676_v43  ;;  %679 = vst [vmem:[%s1265_s26] sm:$0xff] %v671_v44 }
 0x220   : > { %683 = vst [vmem:[%s1265_s26 + $0x20] sm:$0xff] %v675_v47 }
 0x223   : > { %v858_v50 = vpop.f32.mrb[2].mxu0 }
 0x224   : > { %v674_v52 = vmul.f32 %v858_v50, %v507_v46  ;;  %v864_v53 = vpop.f32.mrb[2].mxu1  ;;  %v642_v54 = vpop.f32.mrb[3].mxu0 }
 0x225   : > { %v678_v55 = vmul.f32 %v864_v53, %v515_v48  ;;  %v673_v56 = vmul.f32 %v642_v54, %v505_v49  ;;  %v662_v57 = vpop.f32.mrb[3].mxu1 }
 0x226   : > { %682 = vst [vmem:[%s1265_s26 + $0x18] sm:$0xff] %v674_v52  ;;  %v677_v58 = vmul.f32 %v662_v57, %v513_v51 }
 0x227   : > { %686 = vst [vmem:[%s1265_s26 + $0x38] sm:$0xff] %v678_v55  ;;  %681 = vst [vmem:[%s1265_s26 + $0x10] sm:$0xff] %v673_v56 }
 0x228   : > { %685 = vst [vmem:[%s1265_s26 + $0x30] sm:$0xff] %v677_v58 }
 0x229 PF: > { %s841_s17 = sshll.u32 %s1112_s18, 10  ;;  %s701_s22 = sshll.u32 %s1265_s26, 4  ;;  %s1331_s22 = int_to_ptr.vmem [resolvable:$true] %s701_s22 }
 0x22a   : > { %s1328_s11 = scalar_lea.hbm %s1396_s3, %s841_s17  ;;  %s1335_s23 = scalar_lea.sflag [#allocation5], %s239_s5 }
 0x22b   : > { %s1014_s27 = scalar_lea.vmem %s1331_s22, 1024  ;;  %s1128_s18 = smov [#allocation4]  }
 0x22c   : > { %p1015_p6 = scmp.ne.s32.totalorder %s1331_s22, %s1014_s27  ;;  %s1018_s4 = sshll.u32 %s1128_s18, 4  ;;  %s1019_s4 = int_to_ptr.vmem [resolvable:$false] %s1018_s4 }
 0x22d   : > { %s1020_s29 = scalar_lea.vmem %s1019_s4, 2048  ;;  %p1021_p10 = scmp.lt.s32.totalorder %s1331_s22, %s1019_s4 }
 0x22e   : > { %p1016_p8 = pnand %p1015_p6, %p1223_p7  ;;  %p1022_p11 = scmp.lt.s32.totalorder %s1020_s29, %s1014_s27 }
 0x230   : > { %p1017_p9 = pneg %p1016_p8  ;;  %p1023_p13 = por %p1022_p11, %p1021_p10 }
 0x232   : > { %p1024_p0 = pnand %p1023_p13, %p1017_p9 }
 0x234   : > { %1027 = shalt.err (!%p1024_p0)
}
 0x235   : > { %s1028_s5 = scalar_lea.hbm %s1328_s11, 1024  ;;  %s1032_s28 = scalar_lea.hbm %s1396_s3, 2048 }
 0x236   : > { %p1029_p1 = scmp.ne.s32.totalorder %s1328_s11, %s1028_s5  ;;  %p1033_p4 = scmp.lt.u32.totalorder %s1328_s11, %s1396_s3 }
 0x237   : > { %p1034_p5 = scmp.lt.u32.totalorder %s1032_s28, %s1028_s5  ;;  %p1036_p8 = scmp.lt.u32.totalorder %s1028_s5, %s1328_s11 }
 0x238   : > { %p1030_p2 = pnand %p1029_p1, %p1223_p7 }
 0x239   : > { %p1035_p6 = por %p1034_p5, %p1033_p4 }
 0x23a   : > { %p1031_p3 = pneg %p1030_p2 }
 0x23b   : > { %p1037_p9 = por %p1036_p8, %p1035_p6 }
 0x23d   : > { %p1038_p10 = pnand %p1037_p9, %p1031_p3 }
 0x23f   : > { %1041 = shalt.err (!%p1038_p10)
}
 0x240   : > { %s1129_s10 = smov 128   ;;  %s1130_s27 = smov 8  }
 0x241   : > { %883 = dma.vmem_to_hbm [thread:$0]  (%p1223_p7), %s1331_s22, 1024, %s1328_s11, %s1335_s23, %s1129_s10, %s1129_s10, %s1130_s27  }
 0x242 PF: > { %p889_p11 = scmp.ge.s32.totalorder %s1124_s21, 2  ;;  %s716_s18 = sand.u32 1, %s1088_s12  }
 0x243   : > { %s717_s4 = scalar_lea.sflag [#allocation5], %s716_s18 }
 0x244   : > { %p886_p13 = pnand %p889_p11, %p1231_p12 }
 0x246   : > { %1083 = dma.done.wait (!%p886_p13), %s717_s4, 1024  }
 0x247   : > { %1085 = vsyncadd (!%p886_p13), %s717_s4, 4294966272  ;;  %s16_s21 = sadd.s32 1, %s1124_s21   ;;  %s1400_s12 = smov %s1092_s13 }
 0x248   : > { %p13_p0 = scmp.ge.s32.totalorder %s16_s21, 6   ;;  %s1401_s13 = smov %s1096_s14 }
 0x249   : > { %s1402_s14 = smov %s1236_s7  ;;  %s1403_s15 = smov %s1104_s16 }
 0x24a   : > { %s1404_s16 = smov %s1239_s8  ;;  %s1405_s17 = smov %s1116_s19 }
 0x24b   : > { %s1406_s18 = smov %s1120_s20  ;;  %s1407_s19 = smov %s1410_s24 }
 0x24c   : > { %s1408_s20 = smov %s1414_s25  ;;  %15 = sbr.rel (!%p13_p0) target bundleno = 6 (0x6), region = 121 }
 0x253   :  { %722 = vsyncpa [#allocation5], 1 }
 0x254   :  { %724 = vsyncpa [#allocation5 + $0x1], 1 }

</bundles_post_ra>
